<compile_context>
chip_gen: v7x
topology: tpu7x:2x2x1
jax: 0.10.0
libtpu: 0.0.40
codegen_flags: <defaults>
</compile_context>

<pallas_src>
import numpy as np
import jax
import jax.numpy as jnp
from jax import lax
from jax.experimental import pallas as pl
from jax.experimental.pallas import tpu as pltpu

INF = 100000000.0
RADIUS = 1.5
AUDIO_TARGET_RATE = 22050.0 / 128.0
SIZES = [[-1, 0.45608904], [0.45608904, 0.878505635], [0.878505635, 1.557724045],
         [1.557724045, 2.264785525], [2.264785525, 1000]]


def _round_up(x, m):
    return int(-(-x // m) * m)


def _leftness_loss_kernel(anch_ref, ann_ref, log_ref, osum_ref, ocnt_ref):
    """Grid = (batch, anchor_tile) — both axes "parallel" (v7x megacore).

    anch_ref : (8, TN)         merged per-anchor features, lane-dense
                               rows: [pt, RADIUS*stride, size_lo, size_hi, valid, 0,0,0]
    ann_ref  : (1, 4*M_PAD, 1) per-batch annotation columns on the sublane axis
                               rows: [l(0:M), r(M:2M), valid(2M:3M), comp_idx(3M:4M)]
    log_ref  : (1, 2, TN)      per-batch precomputed [log(p), log(1-p)] (lane-dense)
    osum_ref : (1, 1, TN)      this tile's bce lane partials
    ocnt_ref : (1, 1, TN)      this tile's positive-count lane partials
    """
    anch = anch_ref[...]                   # (8, TN)
    pt       = anch[0:1, :]                # (1, TN)
    rad_str  = anch[1:2, :]                # RADIUS * stride (precomputed)
    size_lo  = anch[2:3, :]
    size_hi  = anch[3:4, :]
    a_valid  = anch[4:5, :]

    tn = pt.shape[1]
    m_pad = ann_ref.shape[1] // 4
    n_blk = m_pad // 8

    sub_i = lax.broadcasted_iota(jnp.int32, (8, tn), 0)

    def block_update(blk, carry):
        """Match one sublane block of 8 annotations; merge into running carry."""
        run_min, run_r, run_c = carry              # each (1, TN)
        off = blk * 8
        if not isinstance(off, int):
            off = pl.multiple_of(off, 8)
        l_b = ann_ref[0, pl.ds(off, 8), :]                   # (8, 1)
        r_b = ann_ref[0, pl.ds(m_pad + off, 8), :]
        v_b = ann_ref[0, pl.ds(2 * m_pad + off, 8), :]
        c_b = ann_ref[0, pl.ds(3 * m_pad + off, 8), :]

        # FCOS matching: annotations broadcast down sublanes, anchors on lanes.
        l_star = pt - l_b                                    # (8, TN)
        r_star = r_b - pt
        in_radii = (pt >= l_b) & (pt <= jnp.minimum(r_b, l_b + rad_str))
        max_t = jnp.maximum(l_star, r_star)
        in_range = (max_t >= size_lo) & (max_t <= size_hi)
        valid = (v_b > 0.5) & in_radii & in_range
        area_m = jnp.where(valid, r_b - l_b, INF)            # (8, TN)

        blk_min = jnp.min(area_m, axis=0, keepdims=True)     # (1, TN)
        # first-min within the block (preserves torch's first-argmin tie-break)
        arg = jnp.min(jnp.where(area_m == blk_min, sub_i, 8),
                      axis=0, keepdims=True)
        onehot = sub_i == arg                                # (8, TN)
        r_blk = jnp.sum(jnp.where(onehot, r_star, 0.0), axis=0, keepdims=True)
        c_blk = jnp.sum(jnp.where(onehot, c_b, 0.0), axis=0, keepdims=True)

        # strict '<' keeps the earlier block on ties -> global first-min.
        take = blk_min < run_min
        return (jnp.where(take, blk_min, run_min),
                jnp.where(take, r_blk, run_r),
                jnp.where(take, c_blk, run_c))

    init = (jnp.full((1, tn), INF, dtype=jnp.float32),
            jnp.zeros((1, tn), jnp.float32),
            jnp.zeros((1, tn), jnp.float32))
    if n_blk == 1:
        min_area, r_sel, c_sel = block_update(0, init)
    else:
        min_area, r_sel, c_sel = lax.fori_loop(0, n_blk, block_update, init)

    # positive == (matched compacted annotation index != 0), per original code.
    positive = (min_area < INF) & (c_sel != 0.0) & (a_valid > 0.5)   # (1, TN)

    # For positive anchors l*+r* == r-l == min_area, so
    #   target = sqrt(r_sel / min_area) = r_sel * rsqrt(r_sel * min_area).
    prod = r_sel * min_area
    safe = jnp.where(positive & (prod > 0.0), prod, 1.0)
    target = jnp.where(positive, r_sel, 0.0) * lax.rsqrt(safe)       # (1, TN)

    logp   = log_ref[0, 0:1, :]                                      # (1, TN)
    log1mp = log_ref[0, 1:2, :]
    bce = -(log1mp + target * (logp - log1mp))

    osum_ref[0] = jnp.where(positive, bce, 0.0)
    ocnt_ref[0] = positive.astype(jnp.float32)


def leftness_loss_fcos(leftnesses, anchors_list, annotations, class_id,
                       anchor_tile=1024):
    """Pallas implementation of LeftnessLoss(fcos=True).forward.

    anchor_tile: anchor-lane tile (multiple of 128).  Default 1024 keeps the
    (8, TN) matching working set inside the 64-vreg file on all of v5e/v6e/v7x;
    sweep {512, 1024, 2048} for a specific n_total if needed.
    """
    leftnesses = jnp.asarray(leftnesses, jnp.float32)
    annotations = jnp.asarray(annotations, jnp.float32)
    B, n_total, C = leftnesses.shape
    assert C == 1, "leftness head has a single channel"

    # ---- per-anchor (batch invariant) features, concatenated over levels ----
    pts, rads, los, his = [], [], [], []
    for i, ap in enumerate(anchors_list):
        ap = jnp.asarray(ap, jnp.float32).reshape(-1)
        s = float(2 ** (i + 1))
        pts.append(ap)
        rads.append(jnp.full_like(ap, RADIUS * s))     # precompute RADIUS*stride
        los.append(jnp.full_like(ap, SIZES[i][0] * AUDIO_TARGET_RATE))
        his.append(jnp.full_like(ap, SIZES[i][1] * AUDIO_TARGET_RATE))
    pts = jnp.concatenate(pts)
    rads = jnp.concatenate(rads)
    los = jnp.concatenate(los)
    his = jnp.concatenate(his)
    assert pts.shape[0] == n_total

    # ---- anchor (lane) tiling ----
    tn = min(_round_up(int(anchor_tile), 128), _round_up(n_total, 128))
    n_pad = _round_up(n_total, tn)
    n_tiles = n_pad // tn

    def pad_lane(x, fill=0.0):
        return jnp.pad(x, (0, n_pad - n_total), constant_values=fill)

    zeros_row = jnp.zeros((n_pad,), jnp.float32)
    # Merged lane-dense slab; rows = [pt, RADIUS*stride, size_lo, size_hi, valid, 0,0,0]
    anchor_slab = jnp.stack([
        pad_lane(pts),
        pad_lane(rads, RADIUS),
        pad_lane(los),
        pad_lane(his),
        pad_lane(jnp.ones((n_total,), jnp.float32)),
        zeros_row, zeros_row, zeros_row,
    ], axis=0)                                                   # (8, n_pad)

    # ---- per-batch annotation columns (annotations on the sublane axis) ----
    M = annotations.shape[1]
    m_pad = _round_up(max(M, 1), 8)
    l = annotations[:, :, 0]
    r = annotations[:, :, 1]
    cls = annotations[:, :, 2]
    valid = ((cls != -1) & (cls == class_id)).astype(jnp.float32)   # (B, M)
    comp = jnp.cumsum(valid, axis=1) - valid                        # exclusive prefix

    def pad_ann(x, fill=0.0):
        return jnp.pad(x, ((0, 0), (0, m_pad - M)), constant_values=fill)

    ann_cols = jnp.concatenate(
        [pad_ann(l), pad_ann(r), pad_ann(valid), pad_ann(comp)],
        axis=1)[:, :, None]                                      # (B, 4*m_pad, 1)

    # ---- BCE log terms hoisted out of the kernel (dense XLA, once per batch) ----
    p = jnp.clip(leftnesses[:, :, 0], 0.0001, 1.0 - 0.0001)         # (B, n)
    logp = jnp.pad(jnp.log(p), ((0, 0), (0, n_pad - n_total)))
    log1mp = jnp.pad(jnp.log(1.0 - p), ((0, 0), (0, n_pad - n_total)))
    log_slab = jnp.stack([logp, log1mp], axis=1)                 # (B, 2, n_pad)

    out_sum, out_cnt = pl.pallas_call(
        _leftness_loss_kernel,
        out_shape=(jax.ShapeDtypeStruct((B, 1, n_pad), jnp.float32),
                   jax.ShapeDtypeStruct((B, 1, n_pad), jnp.float32)),
        grid_spec=pltpu.PrefetchScalarGridSpec(
            num_scalar_prefetch=0,
            grid=(B, n_tiles),
            in_specs=[
                pl.BlockSpec((8, tn), lambda b, t: (0, t)),               # anchor slab
                pl.BlockSpec((1, 4 * m_pad, 1), lambda b, t: (b, 0, 0)),  # annotations
                pl.BlockSpec((1, 2, tn), lambda b, t: (b, 0, t)),         # log(p), log(1-p)
            ],
            out_specs=[
                pl.BlockSpec((1, 1, tn), lambda b, t: (b, 0, t)),         # bce partials
                pl.BlockSpec((1, 1, tn), lambda b, t: (b, 0, t)),         # pos-count partials
            ],
        ),
        compiler_params=pltpu.CompilerParams(
            dimension_semantics=("parallel", "parallel")),       # megacore over B*tiles
    )(anchor_slab, ann_cols, log_slab)

    # Lane/tile partials -> per-batch scalars; exact count divide + batch mean here.
    bce_sum = jnp.sum(out_sum[:, 0, :], axis=-1)                 # (B,)
    pos_cnt = jnp.sum(out_cnt[:, 0, :], axis=-1)                 # (B,)
    per_batch = bce_sum / pos_cnt   # NaN if no positives (matches torch mean of empty)
    return jnp.mean(per_batch, keepdims=True)                    # (1,) mean(dim=0, keepdim=True)


# ---------------- numpy reference (mirrors the PyTorch code) ----------------
def _reference(leftnesses, anchors_list, annotations, class_id):
    B = leftnesses.shape[0]
    losses = []
    for j in range(B):
        p = np.clip(leftnesses[j].astype(np.float32), 0.0001, 1.0 - 0.0001)
        ann = annotations[j]
        ann = ann[ann[:, 2] != -1]
        annc = ann[ann[:, 2] == class_id]
        pos_list, ls_list, rs_list = [], [], []
        for i, ap in enumerate(anchors_list):
            stride = 2 ** (i + 1)
            a = ap.astype(np.float32)[:, None]
            l_ = annc[:, 0][None, :]
            r_ = annc[:, 1][None, :]
            ls = a - l_
            rs = r_ - a
            in_radii = (a >= l_) & (a <= np.minimum(r_, l_ + RADIUS * stride))
            mx = np.maximum(ls, rs)
            lo = np.float32(SIZES[i][0] * AUDIO_TARGET_RATE)
            hi = np.float32(SIZES[i][1] * AUDIO_TARGET_RATE)
            in_range = (mx >= lo) & (mx <= hi)
            area = np.broadcast_to((annc[:, 1] - annc[:, 0])[None, :], ls.shape).copy()
            area[~in_radii] = INF
            area[~in_range] = INF
            arg = area.argmin(axis=1)
            n = a.shape[0]
            pos_list.append(arg.astype(np.float32))
            ls_list.append(ls[np.arange(n), arg])
            rs_list.append(rs[np.arange(n), arg])
        pos = np.concatenate(pos_list).astype(bool)
        lsA = np.concatenate(ls_list)[pos]
        rsA = np.concatenate(rs_list)[pos]
        t = np.sqrt(rsA / (lsA + rsA))[:, None]
        bce = -(t * np.log(p[pos, :]) + (1.0 - t) * np.log(1.0 - p[pos, :]))
        losses.append(bce.mean())
    return np.array([np.mean(np.stack(losses))], dtype=np.float32)


if __name__ == "__main__":
    key = jax.random.PRNGKey(0)
    B = 2
    class_id = 1
    level_sizes = [16, 8, 4]
    anchors_list = []
    for i, n in enumerate(level_sizes):
        stride = 2 ** (i + 1)
        anchors_list.append((jnp.arange(n, dtype=jnp.float32) + 0.5) * stride)
    n_total = sum(level_sizes)

    annotations = jnp.array([
        [[2.0, 60.0, 1.0],
         [10.0, 40.0, 1.0],
         [5.0, 20.0, 0.0],
         [0.0, 0.0, -1.0],
         [0.0, 0.0, -1.0]],
        [[1.0, 50.0, 1.0],
         [20.0, 45.0, 1.0],
         [3.0, 7.0, 2.0],
         [0.0, 0.0, -1.0],
         [0.0, 0.0, -1.0]],
    ], dtype=jnp.float32)

    leftnesses = jax.random.uniform(key, (B, n_total, 1), dtype=jnp.float32,
                                    minval=0.05, maxval=0.95)

    out = leftness_loss_fcos(leftnesses, anchors_list, annotations, class_id)
    out = jax.block_until_ready(out)

    ref = _reference(np.asarray(leftnesses),
                     [np.asarray(a) for a in anchors_list],
                     np.asarray(annotations), class_id)
    assert out.shape == (1,)
    np.testing.assert_allclose(np.asarray(out), ref, rtol=1e-4, atol=1e-5)
    print("KERNEL_OK")
</pallas_src>

<mosaic_0001>
module attributes {stable_mosaic.version = 11 : i64} {
  func.func @_leftness_loss_kernel(%arg0: i32, %arg1: i32, %arg2: memref<8x128xf32, #tpu.memory_space<vmem>>, %arg3: memref<1x32x1xf32, #tpu.memory_space<vmem>>, %arg4: memref<1x2x128xf32, #tpu.memory_space<vmem>>, %arg5: memref<1x1x128xf32, #tpu.memory_space<vmem>>, %arg6: memref<1x1x128xf32, #tpu.memory_space<vmem>>) attributes {dimension_semantics = [#tpu.dimension_semantics<parallel>, #tpu.dimension_semantics<parallel>], iteration_bounds = array<i64: 2, 1>, scalar_prefetch = 0 : i64, scratch_operands = 0 : i64, tpu.core_type = #tpu.core_type<tc>, window_params = [{transform_indices = @transform_0, window_bounds = array<i64: 8, 128>}, {transform_indices = @transform_1, window_bounds = array<i64: 1, 32, 1>}, {transform_indices = @transform_2, window_bounds = array<i64: 1, 2, 128>}, {transform_indices = @transform_3, window_bounds = array<i64: 1, 1, 128>}, {transform_indices = @transform_4, window_bounds = array<i64: 1, 1, 128>}]} {
    %c0 = arith.constant 0 : index
    %c0_0 = arith.constant 0 : index
    %0 = vector.load %arg2[%c0, %c0_0] : memref<8x128xf32, #tpu.memory_space<vmem>>, vector<8x128xf32>
    %1 = vector.extract_strided_slice %0 {offsets = [0, 0], sizes = [1, 128], strides = [1, 1]} : vector<8x128xf32> to vector<1x128xf32>
    %2 = vector.extract_strided_slice %0 {offsets = [1, 0], sizes = [1, 128], strides = [1, 1]} : vector<8x128xf32> to vector<1x128xf32>
    %3 = vector.extract_strided_slice %0 {offsets = [2, 0], sizes = [1, 128], strides = [1, 1]} : vector<8x128xf32> to vector<1x128xf32>
    %4 = vector.extract_strided_slice %0 {offsets = [3, 0], sizes = [1, 128], strides = [1, 1]} : vector<8x128xf32> to vector<1x128xf32>
    %5 = vector.extract_strided_slice %0 {offsets = [4, 0], sizes = [1, 128], strides = [1, 1]} : vector<8x128xf32> to vector<1x128xf32>
    %6 = tpu.iota {dimensions = array<i32: 0>} : vector<8x128xi32>
    %cst = arith.constant 1.000000e+08 : f32
    %7 = vector.broadcast %cst : f32 to vector<1x128xf32>
    %cst_1 = arith.constant 0.000000e+00 : f32
    %8 = vector.broadcast %cst_1 : f32 to vector<1x128xf32>
    %cst_2 = arith.constant 0.000000e+00 : f32
    %9 = vector.broadcast %cst_2 : f32 to vector<1x128xf32>
    %c0_3 = arith.constant 0 : index
    %c0_4 = arith.constant 0 : index
    %c0_5 = arith.constant 0 : index
    %10 = vector.load %arg3[%c0_3, %c0_4, %c0_5] : memref<1x32x1xf32, #tpu.memory_space<vmem>>, vector<1x8x1xf32>
    %11 = vector.shape_cast %10 : vector<1x8x1xf32> to vector<8x1xf32>
    %c0_6 = arith.constant 0 : index
    %c8 = arith.constant 8 : index
    %c0_7 = arith.constant 0 : index
    %12 = vector.load %arg3[%c0_6, %c8, %c0_7] : memref<1x32x1xf32, #tpu.memory_space<vmem>>, vector<1x8x1xf32>
    %13 = vector.shape_cast %12 : vector<1x8x1xf32> to vector<8x1xf32>
    %c0_8 = arith.constant 0 : index
    %c16 = arith.constant 16 : index
    %c0_9 = arith.constant 0 : index
    %14 = vector.load %arg3[%c0_8, %c16, %c0_9] : memref<1x32x1xf32, #tpu.memory_space<vmem>>, vector<1x8x1xf32>
    %15 = vector.shape_cast %14 : vector<1x8x1xf32> to vector<8x1xf32>
    %c0_10 = arith.constant 0 : index
    %c24 = arith.constant 24 : index
    %c0_11 = arith.constant 0 : index
    %16 = vector.load %arg3[%c0_10, %c24, %c0_11] : memref<1x32x1xf32, #tpu.memory_space<vmem>>, vector<1x8x1xf32>
    %17 = vector.shape_cast %16 : vector<1x8x1xf32> to vector<8x1xf32>
    %18 = vector.broadcast %1 : vector<1x128xf32> to vector<8x128xf32>
    %19 = vector.broadcast %11 : vector<8x1xf32> to vector<8x128xf32>
    %20 = arith.subf %18, %19 : vector<8x128xf32>
    %21 = vector.broadcast %13 : vector<8x1xf32> to vector<8x128xf32>
    %22 = vector.broadcast %1 : vector<1x128xf32> to vector<8x128xf32>
    %23 = arith.subf %21, %22 : vector<8x128xf32>
    %24 = vector.broadcast %1 : vector<1x128xf32> to vector<8x128xf32>
    %25 = vector.broadcast %11 : vector<8x1xf32> to vector<8x128xf32>
    %26 = arith.cmpf oge, %24, %25 : vector<8x128xf32>
    %27 = vector.broadcast %11 : vector<8x1xf32> to vector<8x128xf32>
    %28 = vector.broadcast %2 : vector<1x128xf32> to vector<8x128xf32>
    %29 = arith.addf %27, %28 : vector<8x128xf32>
    %30 = vector.broadcast %13 : vector<8x1xf32> to vector<8x128xf32>
    %31 = arith.minimumf %30, %29 : vector<8x128xf32>
    %32 = vector.broadcast %1 : vector<1x128xf32> to vector<8x128xf32>
    %33 = arith.cmpf ole, %32, %31 : vector<8x128xf32>
    %34 = arith.andi %26, %33 : vector<8x128xi1>
    %35 = arith.maximumf %20, %23 : vector<8x128xf32>
    %36 = vector.broadcast %3 : vector<1x128xf32> to vector<8x128xf32>
    %37 = arith.cmpf oge, %35, %36 : vector<8x128xf32>
    %38 = vector.broadcast %4 : vector<1x128xf32> to vector<8x128xf32>
    %39 = arith.cmpf ole, %35, %38 : vector<8x128xf32>
    %40 = arith.andi %37, %39 : vector<8x128xi1>
    %cst_12 = arith.constant 5.000000e-01 : f32
    %41 = vector.broadcast %cst_12 : f32 to vector<8x1xf32>
    %42 = arith.cmpf ogt, %15, %41 : vector<8x1xf32>
    %43 = vector.broadcast %42 : vector<8x1xi1> to vector<8x128xi1>
    %44 = arith.andi %43, %34 : vector<8x128xi1>
    %45 = arith.andi %44, %40 : vector<8x128xi1>
    %46 = arith.subf %13, %11 : vector<8x1xf32>
    %cst_13 = arith.constant 1.000000e+08 : f32
    %47 = vector.shape_cast %46 : vector<8x1xf32> to vector<8x1xf32>
    %48 = vector.broadcast %47 : vector<8x1xf32> to vector<8x128xf32>
    %49 = vector.broadcast %cst_13 : f32 to vector<8x128xf32>
    %50 = arith.select %45, %48, %49 : vector<8x128xi1>, vector<8x128xf32>
    %cst_14 = arith.constant dense<0x7F800000> : vector<128xf32>
    %51 = vector.multi_reduction <minimumf>, %50, %cst_14 [0] : vector<8x128xf32> to vector<128xf32>
    %52 = vector.shape_cast %51 : vector<128xf32> to vector<1x128xf32>
    %53 = vector.broadcast %52 : vector<1x128xf32> to vector<8x128xf32>
    %54 = arith.cmpf oeq, %50, %53 : vector<8x128xf32>
    %c8_i32 = arith.constant 8 : i32
    %55 = vector.broadcast %c8_i32 : i32 to vector<8x128xi32>
    %56 = arith.select %54, %6, %55 : vector<8x128xi1>, vector<8x128xi32>
    %cst_15 = arith.constant dense<2147483647> : vector<128xi32>
    %57 = vector.multi_reduction <minsi>, %56, %cst_15 [0] : vector<8x128xi32> to vector<128xi32>
    %58 = vector.shape_cast %57 : vector<128xi32> to vector<1x128xi32>
    %59 = vector.broadcast %58 : vector<1x128xi32> to vector<8x128xi32>
    %60 = arith.cmpi eq, %6, %59 : vector<8x128xi32>
    %cst_16 = arith.constant 0.000000e+00 : f32
    %61 = vector.broadcast %cst_16 : f32 to vector<8x128xf32>
    %62 = arith.select %60, %23, %61 : vector<8x128xi1>, vector<8x128xf32>
    %cst_17 = arith.constant dense<0.000000e+00> : vector<128xf32>
    %63 = vector.multi_reduction <add>, %62, %cst_17 [0] : vector<8x128xf32> to vector<128xf32>
    %64 = vector.shape_cast %63 : vector<128xf32> to vector<1x128xf32>
    %cst_18 = arith.constant 0.000000e+00 : f32
    %65 = vector.shape_cast %17 : vector<8x1xf32> to vector<8x1xf32>
    %66 = vector.broadcast %65 : vector<8x1xf32> to vector<8x128xf32>
    %67 = vector.broadcast %cst_18 : f32 to vector<8x128xf32>
    %68 = arith.select %60, %66, %67 : vector<8x128xi1>, vector<8x128xf32>
    %cst_19 = arith.constant dense<0.000000e+00> : vector<128xf32>
    %69 = vector.multi_reduction <add>, %68, %cst_19 [0] : vector<8x128xf32> to vector<128xf32>
    %70 = vector.shape_cast %69 : vector<128xf32> to vector<1x128xf32>
    %71 = arith.cmpf olt, %52, %7 : vector<1x128xf32>
    %72 = arith.select %71, %52, %7 : vector<1x128xi1>, vector<1x128xf32>
    %73 = arith.select %71, %64, %8 : vector<1x128xi1>, vector<1x128xf32>
    %74 = arith.select %71, %70, %9 : vector<1x128xi1>, vector<1x128xf32>
    %cst_20 = arith.constant 1.000000e+08 : f32
    %75 = vector.broadcast %cst_20 : f32 to vector<1x128xf32>
    %76 = arith.cmpf olt, %72, %75 : vector<1x128xf32>
    %cst_21 = arith.constant 0.000000e+00 : f32
    %77 = vector.broadcast %cst_21 : f32 to vector<1x128xf32>
    %78 = arith.cmpf one, %74, %77 : vector<1x128xf32>
    %79 = arith.andi %76, %78 : vector<1x128xi1>
    %cst_22 = arith.constant 5.000000e-01 : f32
    %80 = vector.broadcast %cst_22 : f32 to vector<1x128xf32>
    %81 = arith.cmpf ogt, %5, %80 : vector<1x128xf32>
    %82 = arith.andi %79, %81 : vector<1x128xi1>
    %83 = arith.mulf %73, %72 : vector<1x128xf32>
    %cst_23 = arith.constant 0.000000e+00 : f32
    %84 = vector.broadcast %cst_23 : f32 to vector<1x128xf32>
    %85 = arith.cmpf ogt, %83, %84 : vector<1x128xf32>
    %86 = arith.andi %82, %85 : vector<1x128xi1>
    %cst_24 = arith.constant 1.000000e+00 : f32
    %87 = vector.broadcast %cst_24 : f32 to vector<1x128xf32>
    %88 = arith.select %86, %83, %87 : vector<1x128xi1>, vector<1x128xf32>
    %cst_25 = arith.constant 0.000000e+00 : f32
    %89 = vector.broadcast %cst_25 : f32 to vector<1x128xf32>
    %90 = arith.select %82, %73, %89 : vector<1x128xi1>, vector<1x128xf32>
    %91 = math.rsqrt %88 : vector<1x128xf32>
    %92 = arith.mulf %90, %91 : vector<1x128xf32>
    %c0_26 = arith.constant 0 : index
    %c0_27 = arith.constant 0 : index
    %c0_28 = arith.constant 0 : index
    %93 = vector.load %arg4[%c0_26, %c0_27, %c0_28] : memref<1x2x128xf32, #tpu.memory_space<vmem>>, vector<1x1x128xf32>
    %94 = vector.shape_cast %93 : vector<1x1x128xf32> to vector<1x128xf32>
    %c0_29 = arith.constant 0 : index
    %c1 = arith.constant 1 : index
    %c0_30 = arith.constant 0 : index
    %95 = vector.load %arg4[%c0_29, %c1, %c0_30] : memref<1x2x128xf32, #tpu.memory_space<vmem>>, vector<1x1x128xf32>
    %96 = vector.shape_cast %95 : vector<1x1x128xf32> to vector<1x128xf32>
    %97 = arith.subf %94, %96 : vector<1x128xf32>
    %98 = arith.mulf %92, %97 : vector<1x128xf32>
    %99 = arith.addf %96, %98 : vector<1x128xf32>
    %cst_31 = arith.constant 0.000000e+00 : f32
    %100 = vector.broadcast %cst_31 : f32 to vector<1x128xf32>
    %101 = arith.subf %100, %99 : vector<1x128xf32>
    %cst_32 = arith.constant 0.000000e+00 : f32
    %102 = vector.broadcast %cst_32 : f32 to vector<1x128xf32>
    %103 = arith.select %82, %101, %102 : vector<1x128xi1>, vector<1x128xf32>
    %c0_33 = arith.constant 0 : index
    %c0_34 = arith.constant 0 : index
    %c0_35 = arith.constant 0 : index
    %104 = vector.load %arg5[%c0_33, %c0_34, %c0_35] : memref<1x1x128xf32, #tpu.memory_space<vmem>>, vector<1x1x128xf32>
    %105 = vector.shape_cast %104 : vector<1x1x128xf32> to vector<1x128xf32>
    %106 = vector.shape_cast %103 : vector<1x128xf32> to vector<1x1x128xf32>
    tpu.vector_store %arg5[%c0_33, %c0_34, %c0_35], %106 {strides = array<i32>} : memref<1x1x128xf32, #tpu.memory_space<vmem>>, vector<1x1x128xf32>,
    %107 = arith.extui %82 : vector<1x128xi1> to vector<1x128xi32>
    %108 = arith.sitofp %107 : vector<1x128xi32> to vector<1x128xf32>
    %c0_36 = arith.constant 0 : index
    %c0_37 = arith.constant 0 : index
    %c0_38 = arith.constant 0 : index
    %109 = vector.load %arg6[%c0_36, %c0_37, %c0_38] : memref<1x1x128xf32, #tpu.memory_space<vmem>>, vector<1x1x128xf32>
    %110 = vector.shape_cast %109 : vector<1x1x128xf32> to vector<1x128xf32>
    %111 = vector.shape_cast %108 : vector<1x128xf32> to vector<1x1x128xf32>
    tpu.vector_store %arg6[%c0_36, %c0_37, %c0_38], %111 {strides = array<i32>} : memref<1x1x128xf32, #tpu.memory_space<vmem>>, vector<1x1x128xf32>,
    return
  }
  func.func @transform_0(%arg0: i32, %arg1: i32) -> (i32, i32) {
    %c0_i32 = arith.constant 0 : i32
    %c0_i32_0 = arith.constant 0 : i32
    return %c0_i32, %arg1 : i32, i32
  }
  func.func @transform_1(%arg0: i32, %arg1: i32) -> (i32, i32, i32) {
    %c0_i32 = arith.constant 0 : i32
    %c0_i32_0 = arith.constant 0 : i32
    %c0_i32_1 = arith.constant 0 : i32
    return %arg0, %c0_i32, %c0_i32_0 : i32, i32, i32
  }
  func.func @transform_2(%arg0: i32, %arg1: i32) -> (i32, i32, i32) {
    %c0_i32 = arith.constant 0 : i32
    %c0_i32_0 = arith.constant 0 : i32
    return %arg0, %c0_i32, %arg1 : i32, i32, i32
  }
  func.func @transform_3(%arg0: i32, %arg1: i32) -> (i32, i32, i32) {
    %c0_i32 = arith.constant 0 : i32
    %c0_i32_0 = arith.constant 0 : i32
    return %arg0, %c0_i32, %arg1 : i32, i32, i32
  }
  func.func @transform_4(%arg0: i32, %arg1: i32) -> (i32, i32, i32) {
    %c0_i32 = arith.constant 0 : i32
    %c0_i32_0 = arith.constant 0 : i32
    return %arg0, %c0_i32, %arg1 : i32, i32, i32
  }
}

</mosaic_0001>

<bundles_post_ra>
// kernel: tpu_custom_call.1
= control target key start
LH: loop header
LB: loop body
LE: loop exit
PB: predicated region body
PF: predicated region fallthrough
CT: control target
= control target key end

     0   :  { %10 = vsyncpa [#allocation3], 0  ;;  %s958_s0 = inlined_call_operand.vmem [shape: f32[8,128], index: 0, kind: input, shape index: {}]   ;;  %s959_s1 = inlined_call_operand.vmem [shape: f32[2,32,1], index: 1, kind: input, shape index: {}]   ;;  %s960_s2 = inlined_call_operand.vmem [shape: f32[2,2,128], index: 2, kind: input, shape index: {}]   ;;  %s961_s3 = inlined_call_operand.hbm [shape: f32[2,1,128], index: 3, kind: output, shape index: {0}]   ;;  %s962_s4 = inlined_call_operand.hbm [shape: f32[2,1,128], index: 4, kind: output, shape index: {1}]  }
   0x1   :  { %12 = vsyncpa [#allocation3 + $0x1], 0 }
   0x2   :  { %13 = vsyncpa [#allocation5], 0 }
   0x3   :  { %15 = vsyncpa [#allocation5 + $0x1], 0  ;;  %s775_s15 = smov 0   ;;  %s777_s16 = smov 0  }
   0x4   :  { %s779_s17 = smov 0   ;;  %s781_s18 = smov 0  }
   0x5   :  { %s783_s19 = smov 0   ;;  %s785_s20 = smov 0  }
   0x6 LB: > { %s553_s21 = sadd.s32 4294967295, %s744_s20   ;;  %s554_s22 = sadd.s32 4294967294, %s744_s20   ;;  %s744_s20 = sphi %s785_s20, %s21_s20   ;;  %s740_s19 = sphi %s783_s19, %s971_s19   ;;  %s736_s18 = sphi %s781_s18, %s970_s18   ;;  %s732_s17 = sphi %s779_s17, %s969_s17   ;;  %s728_s16 = sphi %s777_s16, %s968_s16   ;;  %s724_s15 = sphi %s775_s15, %s967_s15  }
   0x7   : > { %s33_s23 = sadd.s32 1, %s740_s19  ;;  %s122_s24 = sadd.s32 1, %s732_s17 }
   0x8   : > { %p35_p0 = scmp.ge.s32.totalorder %s33_s23, 2  ;;  %p132_p1 = scmp.ne.s32.totalorder %s732_s17, %s728_s16 }
   0x9   : > { %p133_p2 = scmp.eq.s32.totalorder %s553_s21, 1  ;;  %p138_p3 = scmp.ne.s32.totalorder %s728_s16, %s724_s15 }
   0xa   : > { %s973_s23 = smov (%p35_p0, %s33_s23), 0  ;;  %p139_p5 = scmp.eq.s32.totalorder %s554_s22, 1 }
   0xb   : > { %p815_p4 = por %p133_p2, %p132_p1  ;;  %s117_s26 = ssub.s32 %s740_s19, %s973_s23 }
   0xc   : > { %p558_p6 = scmp.ge.s32.totalorder %s744_s20, 1  ;;  %p120_p7 = scmp.eq.s32.totalorder %s117_s26, 0 }
   0xd   : > { %p822_p8 = por %p139_p5, %p138_p3  ;;  %p210_p9 = scmp.lt.s32.totalorder %s744_s20, 3 }
   0xe   : > { %s828_s28 = scalar_select %p120_p7, %s732_s17, %s122_s24  }
   0xf   : > { %p211_p10 = pnand %p558_p6, %p210_p9 }
  0x10   : > { %p254_p11 = scmp.lt.s32.totalorder (!%p211_p10), %s736_s18, 1  ;;  %v746_v0 = vmov (!%p211_p10), 0   ;;  %v267_v7 = vlaneseq (!%p211_p10)  ;;  %v841_v10 = vld [vmem:[%s958_s0] sm:$0xff] (!%p211_p10)  ;;  %s848_s10 = sand.u32 (!%p211_p10), 1, %s728_s16   ;;  %v747_v61 = vmov (!%p211_p10), 0.0  }
  0x11   : > { %214 = sbr.rel (%p211_p10) target bundleno = 258 (0x102), region = 32  ;;  %630 = vset.pattern.permute.xlu0 (!%p211_p10), %v746_v0  ;;  %631 = vset.pattern.permute.xlu1 (!%p211_p10), %v746_v0  ;;  %s563_s11 = sshll.u32 (!%p211_p10), %s736_s18, 4 }
  0x12   : > { %v268_v8 = vshrl.u32 (!%p211_p10), %v267_v7, 7  ;;  %s249_s12 = scalar_lea.vmem (!%p211_p10), [#allocation4], %s848_s10  ;;  %s863_s24 = scalar_lea.hbm (!%p211_p10), %s962_s4, %s563_s11 }
  0x13   : > { %s430_s13 = sshll.u32 (!%p211_p10), %s249_s12, 4  ;;  %s403_s5 = scalar_lea.sflag (!%p211_p10), [#allocation5], %s848_s10  ;;  %s865_s13 = int_to_ptr.vmem [resolvable:$true] %s430_s13 }
  0x14   : > { %v292_v9 = vsub.s32 (!%p211_p10), 1, %v268_v8  ;;  %v275_v11 = vsub.s32 (!%p211_p10), 0, %v268_v8  ;;  %v301_v14 = vsub.s32 (!%p211_p10), 2, %v268_v8  ;;  %v306_v16 = vsub.s32 (!%p211_p10), 3, %v268_v8  ;;  %s634_s6 = scalar_lea.vmem (!%p211_p10), %s865_s13, 16 }
  0x15   : > { %p635_p12 = scmp.ne.s32.totalorder (!%p211_p10), %s865_s13, %s634_s6 }
  0x16   : > { %v293_v12 = vrot.slane (!%p211_p10), %v841_v10, %v292_v9  ;;  %v276_v15 = vrot.slane (!%p211_p10), %v841_v10, %v275_v11  ;;  %v302_v19 = vrot.slane (!%p211_p10), %v841_v10, %v301_v14  ;;  %v307_v24 = vrot.slane (!%p211_p10), %v841_v10, %v306_v16 }
  0x17   : > { %p636_p13 = pnand (!%p211_p10), %p635_p12, %p815_p4 }
  0x18   : > { %s832_s29 = scalar_select %p254_p11, %s736_s18, 1 }
  0x19   : > { %p637_p0 = pneg %p636_p13 }
  0x1a   : > { %s567_s30 = sshll.u32 %s832_s29, 5  ;;  %s561_s14 = sshll.u32 %s832_s29, 1 }
  0x1b   : > { %s258_s7 = scalar_lea.vmem %s959_s1, %s567_s30  ;;  %s874_s30 = scalar_lea.vmem %s960_s2, %s561_s14 }
  0x1c   : > { %v269_v1 = vld [vmem:[%s258_s7] sm:$0xff]  ;;  %v270_v2 = vld [vmem:[%s258_s7 + $0x8] sm:$0xff]  ;;  %v271_v3 = vld [vmem:[%s258_s7 + $0x10] sm:$0xff] }
  0x1d   : > { %279 = vperm.xlu0 %630, %v269_v1   ;;  %vm310_vm0 = vcmp.gt.f32.partialorder %v271_v3, 0.5  ;;  %v318_v5 = vsub.f32 %v270_v2, %v269_v1  ;;  %v272_v6 = vld [vmem:[%s258_s7 + $0x18] sm:$0xff]  ;;  %s748_s7 = smov [#allocation4]  }
  0x1e   : > { %v311_v4 = vsel %vm310_vm0, 1, %v746_v0  ;;  %vm369_vm0 = vcmp.gt.f32.partialorder %v841_v10, 0.5  ;;  %s638_s8 = sshll.u32 %s748_s7, 4  ;;  %s639_s8 = int_to_ptr.vmem [resolvable:$false] %s638_s8 }
  0x1f   : > { %313 = vperm.xlu1 %631, %v311_v4   ;;  %s640_s9 = scalar_lea.vmem %s639_s8, 32  ;;  %p641_p1 = scmp.lt.s32.totalorder %s865_s13, %s639_s8 }
  0x20   : > { %p642_p2 = scmp.lt.s32.totalorder %s640_s9, %s634_s6 }
  0x21   : > { %285 = vperm.xlu0 %630, %v270_v2  }
  0x22   : > { %p643_p3 = por %p642_p2, %p641_p1 }
  0x23   : > { %321 = vperm.xlu1 %631, %v318_v5  }
  0x24   : > { %p644_p5 = pnand %p643_p3, %p637_p0 }
  0x25   : > { %352 = vperm.xlu0 %630, %v272_v6  }
  0x9c   : > { %v280_v13 = vpop.permute.xlu0 %279 }
  0x9d   : > { %v294_v17 = vadd.f32 %v293_v12, %v280_v13  ;;  %v282_v20 = vsub.f32 %v276_v15, %v280_v13  ;;  %vm289_vm2 = vcmp.ge.f32.partialorder %v276_v15, %v280_v13 }
  0x9e   : > { %v314_v21 = vpop.permute.xlu1 %313 }
  0x9f   : > { %vm315_vm1 = vcmp.eq.s32.totalorder %v314_v21, 1 }
  0xa0   : > { %v286_v18 = vpop.permute.xlu0 %285 }
  0xa1   : > { %v288_v22 = vsub.f32 %v286_v18, %v276_v15  ;;  %v295_v23 = vmin.f32 %v286_v18, %v294_v17 }
  0xa2   : > { %v322_v26 = vpop.permute.xlu1 %321 }
  0xa3   : > { %vm296_vm3 = vcmp.le.f32.partialorder %v276_v15, %v295_v23  ;;  %v298_v25 = vmax.f32 %v282_v20, %v288_v22 }
  0xa4   : > { %vm297_vm4 = vmand %vm289_vm2, %vm296_vm3  ;;  %v353_v41 = vpop.permute.xlu0 %352 }
  0xa5   : > { %vm303_vm5 = vcmp.ge.f32.partialorder %v298_v25, %v302_v19  ;;  %vm308_vm6 = vcmp.le.f32.partialorder %v298_v25, %v307_v24  ;;  %vm316_vm7 = vmand %vm315_vm1, %vm297_vm4 }
  0xa6   : > { %vm309_vm8 = vmand %vm303_vm5, %vm308_vm6 }
  0xa7   : > { %vm317_vm9 = vmand %vm316_vm7, %vm309_vm8 }
  0xa8   : > { %v324_v27 = vsel %vm317_vm9, %v322_v26, 1e+08 }
  0xa9   : > { %v325_v28 = vrot.slane %v324_v27, 4 }
  0xab   : > { %v326_v29 = vmin.f32 %v324_v27, %v325_v28 }
  0xad   : > { %v327_v30 = vrot.slane %v326_v29, 2 }
  0xaf   : > { %v328_v31 = vmin.f32 %v326_v29, %v327_v30 }
  0xb1   : > { %v329_v32 = vrot.slane %v328_v31, 1 }
  0xb3   : > { %v330_v33 = vmin.f32 %v328_v31, %v329_v32 }
  0xb5   : > { %vm331_vm10 = vcmp.eq.f32.partialorder %v324_v27, %v330_v33  ;;  %vm362_vm15 = vcmp.lt.f32.partialorder %v330_v33, 1e+08 }
  0xb6   : > { %v332_v34 = vsel %vm331_vm10, %v268_v8, 8  ;;  %v363_v56 = vsel %vm362_vm15, %v330_v33, 1e+08 }
  0xb7   : > { %v333_v35 = vrot.slane %v332_v34, 4  ;;  %vm366_vm1 = vcmp.lt.f32.partialorder %v363_v56, 1e+08 }
  0xb9   : > { %vm334_vm11 = vcmp.lt.s32.totalorder %v332_v34, %v333_v35 }
  0xba   : > { %v335_v36 = vsel %vm334_vm11, %v332_v34, %v333_v35 }
  0xbb   : > { %v336_v37 = vrot.slane %v335_v36, 2 }
  0xbd   : > { %vm337_vm12 = vcmp.lt.s32.totalorder %v335_v36, %v336_v37 }
  0xbe   : > { %v338_v38 = vsel %vm337_vm12, %v335_v36, %v336_v37 }
  0xbf   : > { %v339_v39 = vrot.slane %v338_v38, 1 }
  0xc1   : > { %vm340_vm13 = vcmp.lt.s32.totalorder %v338_v38, %v339_v39 }
  0xc2   : > { %v341_v40 = vsel %vm340_vm13, %v338_v38, %v339_v39 }
  0xc3   : > { %vm342_vm14 = vcmp.eq.s32.totalorder %v268_v8, %v341_v40 }
  0xc4   : > { %v343_v42 = vsel %vm342_vm14, %v288_v22, 0.0  ;;  %v355_v43 = vsel %vm342_vm14, %v353_v41, 0.0 }
  0xc5   : > { %v344_v44 = vrot.slane %v343_v42, 4  ;;  %v356_v45 = vrot.slane %v355_v43, 4 }
  0xc7   : > { %v345_v46 = vadd.f32 %v344_v44, %v343_v42  ;;  %v357_v47 = vadd.f32 %v356_v45, %v355_v43 }
  0xc9   : > { %v346_v48 = vrot.slane %v345_v46, 2  ;;  %v358_v49 = vrot.slane %v357_v47, 2 }
  0xcb   : > { %v347_v50 = vadd.f32 %v346_v48, %v345_v46  ;;  %v359_v51 = vadd.f32 %v358_v49, %v357_v47 }
  0xcd   : > { %v348_v52 = vrot.slane %v347_v50, 1  ;;  %v360_v53 = vrot.slane %v359_v51, 1 }
  0xcf   : > { %v349_v54 = vadd.f32 %v348_v52, %v347_v50  ;;  %v361_v55 = vadd.f32 %v360_v53, %v359_v51 }
  0xd1   : > { %v364_v57 = vsel %vm362_vm15, %v349_v54, 0.0  ;;  %v365_v58 = vsel %vm362_vm15, %v361_v55, 0.0 }
  0xd2   : > { %vm367_vm2 = vcmp.ne.f32.partialorder %v365_v58, 0.0  ;;  %v371_v59 = vmul.f32 %v364_v57, %v363_v56 }
  0xd3   : > { %vm368_vm3 = vmand %vm366_vm1, %vm367_vm2 }
  0xd4   : > { %vm372_vm4 = vcmp.gt.f32.partialorder %v371_v59, 0.0  ;;  %vm854_vm5 = vmand %vm368_vm3, %vm369_vm0 }
  0xd5   : > { %vm373_vm6 = vmand %vm854_vm5, %vm372_vm4  ;;  %v562_v62 = vsel %vm854_vm5, 1.0, %v747_v61 }
  0xd6   : > { %v374_v63 = vsel %vm373_vm6, %v371_v59, 1.0  ;;  %397 = vst [vmem:[%s249_s12 - $0x4] sm:$0x10] %v562_v62 }
  0xd7   : > { %632 = vrsqrt.f32 %v374_v63 }
  0xd8   : > { %647 = shalt.err (!%p644_p5)
}
  0xd9   : > { %s648_s12 = scalar_lea.hbm %s863_s24, 16  ;;  %s652_s22 = scalar_lea.hbm %s962_s4, 32 }
  0xda   : > { %p649_p6 = scmp.ne.s32.totalorder %s863_s24, %s648_s12  ;;  %p653_p10 = scmp.lt.u32.totalorder %s863_s24, %s962_s4 }
  0xdb   : > { %p654_p11 = scmp.lt.u32.totalorder %s652_s22, %s648_s12  ;;  %p656_p13 = scmp.lt.u32.totalorder %s648_s12, %s863_s24 }
  0xdc   : > { %p650_p7 = pnand %p649_p6, %p815_p4 }
  0xdd   : > { %p655_p12 = por %p654_p11, %p653_p10 }
  0xde   : > { %p651_p9 = pneg %p650_p7 }
  0xdf   : > { %p657_p0 = por %p656_p13, %p655_p12 }
  0xe1   : > { %p658_p1 = pnand %p657_p0, %p651_p9 }
  0xe3   : > { %661 = shalt.err (!%p658_p1)
}
  0xe4   : > { %569 = dma.vmem_to_hbm [thread:$0]  (%p815_p4), %s865_s13, 16, %s863_s24, %s403_s5   ;;  %v378_v0 = vld [vmem:[%s874_s30] sm:$0x1]  ;;  %v379_v1 = vld [vmem:[%s874_s30 + $0x1] sm:$0x1]  ;;  %v633_v4 = vpop.eup %632  ;;  %v375_v5 = vsel %vm854_vm5, %v364_v57, 0.0 }
  0xe5   : > { %v380_v2 = vsub.f32 %v378_v0, %v379_v1  ;;  %v377_v6 = vmul.f32 %v633_v4, %v375_v5  ;;  %s243_s6 = scalar_lea.vmem [#allocation2], %s848_s10  ;;  %s908_s30 = scalar_lea.hbm %s961_s3, %s563_s11 }
  0xe6   : > { %s416_s7 = sshll.u32 %s243_s6, 4  ;;  %s399_s5 = scalar_lea.sflag [#allocation3], %s848_s10  ;;  %s910_s7 = int_to_ptr.vmem [resolvable:$true] %s416_s7 }
  0xe7   : > { %v382_v3 = vrot.slane %v380_v2, 4  ;;  %s662_s8 = scalar_lea.vmem %s910_s7, 16  ;;  %s749_s18 = smov [#allocation2]  }
  0xe8   : > { %p663_p2 = scmp.ne.s32.totalorder %s910_s7, %s662_s8  ;;  %s666_s9 = sshll.u32 %s749_s18, 4  ;;  %s667_s9 = int_to_ptr.vmem [resolvable:$false] %s666_s9 }
  0xe9   : > { %v384_v7 = vmul.f32 %v382_v3, %v377_v6  ;;  %s668_s11 = scalar_lea.vmem %s667_s9, 32  ;;  %p669_p6 = scmp.lt.s32.totalorder %s910_s7, %s667_s9 }
  0xea   : > { %p664_p3 = pnand %p663_p2, %p815_p4  ;;  %p670_p7 = scmp.lt.s32.totalorder %s668_s11, %s662_s8 }
  0xeb   : > { %v386_v8 = vrot.slane %v384_v7, 4 }
  0xec   : > { %p665_p5 = pneg %p664_p3  ;;  %p671_p9 = por %p670_p7, %p669_p6 }
  0xed   : > { %v388_v9 = vadd.f32 %v386_v8, %v379_v1 }
  0xee   : > { %p672_p10 = pnand %p671_p9, %p665_p5 }
  0xef   : > { %v389_v10 = vsub.f32 0.0, %v388_v9 }
  0xf1   : > { %v391_v11 = vrot.slane %v389_v10, 4 }
  0xf3   : > { %v393_v12 = vsel %vm854_vm5, %v391_v11, 0.0 }
  0xf4   : > { %394 = vst [vmem:[%s243_s6 - $0x4] sm:$0x10] %v393_v12 }
  0xf5   : > { %675 = shalt.err (!%p672_p10)
}
  0xf6   : > { %s676_s10 = scalar_lea.hbm %s908_s30, 16  ;;  %s680_s21 = scalar_lea.hbm %s961_s3, 32 }
  0xf7   : > { %p677_p11 = scmp.ne.s32.totalorder %s908_s30, %s676_s10  ;;  %p681_p0 = scmp.lt.u32.totalorder %s908_s30, %s961_s3 }
  0xf8   : > { %p682_p1 = scmp.lt.u32.totalorder %s680_s21, %s676_s10  ;;  %p684_p3 = scmp.lt.u32.totalorder %s676_s10, %s908_s30 }
  0xf9   : > { %p678_p12 = pnand %p677_p11, %p815_p4 }
  0xfa   : > { %p683_p2 = por %p682_p1, %p681_p0 }
  0xfb   : > { %p679_p13 = pneg %p678_p12 }
  0xfc   : > { %p685_p5 = por %p684_p3, %p683_p2 }
  0xfe   : > { %p686_p6 = pnand %p685_p5, %p679_p13 }
 0x100   : > { %689 = shalt.err (!%p686_p6)
}
 0x101   : > { %568 = dma.vmem_to_hbm [thread:$0]  (%p815_p4), %s910_s7, 16, %s908_s30, %s399_s5  }
 0x102 PF: > { %p579_p7 = scmp.ge.s32.totalorder %s744_s20, 2  ;;  %s442_s29 = sand.u32 1, %s724_s15  }
 0x103   : > { %s443_s6 = scalar_lea.sflag [#allocation3], %s442_s29 }
 0x104   : > { %p573_p9 = pnand %p579_p7, %p822_p8 }
 0x106   : > { %715 = dma.done.wait (!%p573_p9), %s443_s6, 16  }
 0x107   : > { %717 = vsyncadd (!%p573_p9), %s443_s6, 4294967280  ;;  %s451_s13 = scalar_lea.sflag [#allocation5], %s442_s29 }
 0x108   : > { %719 = dma.done.wait (!%p573_p9), %s451_s13, 16  }
 0x109   : > { %721 = vsyncadd (!%p573_p9), %s451_s13, 4294967280  ;;  %s21_s20 = sadd.s32 1, %s744_s20   ;;  %s967_s15 = smov %s728_s16 }
 0x10a   : > { %p18_p10 = scmp.ge.s32.totalorder %s21_s20, 4   ;;  %s968_s16 = smov %s732_s17 }
 0x10b   : > { %s969_s17 = smov %s828_s28  ;;  %s970_s18 = smov %s740_s19 }
 0x10c   : > { %s971_s19 = smov %s973_s23  ;;  %20 = sbr.rel (!%p18_p10) target bundleno = 6 (0x6), region = 90 }
 0x113   :  { %455 = vsyncpa [#allocation3], 1 }
 0x114   :  { %457 = vsyncpa [#allocation3 + $0x1], 1 }
 0x115   :  { %458 = vsyncpa [#allocation5], 1 }
 0x116   :  { %460 = vsyncpa [#allocation5 + $0x1], 1 }

</bundles_post_ra>
